<compile_context>
chip_gen: v5e
topology: v5e:2x2
jax: 0.10.0
libtpu: 0.0.40
codegen_flags: <defaults>
</compile_context>

<pallas_src>
import math
import jax
import jax.numpy as jnp
from jax.experimental import pallas as pl
from jax.experimental.pallas import tpu as pltpu


def _round_up(v: int, m: int) -> int:
    return (v + m - 1) // m * m


def _linear_kernel(x_ref, wt_ref, b_ref, o_ref):
    # x_ref: (TM, K); wt_ref: (K, N); b_ref: (1, N); o_ref: (TM, N)
    acc = jnp.dot(x_ref[...], wt_ref[...], preferred_element_type=jnp.float32)
    acc = acc + b_ref[...].astype(jnp.float32)
    o_ref[...] = acc.astype(o_ref.dtype)


def pose_projection_forward(x, weight, bias, keypoints: int, dims: int, *,
                            tm: int = 1024, out_dtype=None,
                            force_pallas: bool = False):
    """x: (B, L, latent_dim); weight: (input_feats, latent_dim) [PyTorch layout];
    bias: (input_feats,).  Returns (B, L, keypoints, dims)."""
    B, L, K = x.shape
    N = weight.shape[0]
    assert N == keypoints * dims
    M = B * L
    out_dtype = x.dtype if out_dtype is None else out_dtype

    x2d = x.reshape(M, K)

    # Tiny-problem fallback: fixed pallas_call + per-grid-step overhead (~0.35us
    # per step) dominates sub-microsecond matmuls; let XLA handle those.
    if not force_pallas and (M * N * K) < (1 << 18):
        out2d = (x2d.astype(jnp.float32) @ weight.T.astype(jnp.float32)
                 + bias.astype(jnp.float32)).astype(out_dtype)
        return out2d.reshape(B, L, keypoints, dims)

    # One-time weight transpose to (K, N): the kernel then contracts the last
    # dim of x with the first dim of wt -> no per-tile transpose of the weight.
    wt = weight.T
    b2d = bias.reshape(1, N)

    in_itemsize = jnp.dtype(x.dtype).itemsize
    out_itemsize = jnp.dtype(out_dtype).itemsize
    sublane = max(8, 32 // in_itemsize)        # 8 f32, 16 bf16, 32 int8/fp8

    # Row-tile size: as large as possible (default 1024 rows) but small enough
    # that the grid still has ~8 steps -> pipelining + both v7x TensorCores.
    target_steps = 8
    tm_cap = _round_up(max(pl.cdiv(M, target_steps), sublane), sublane)
    TM = max(sublane, min(_round_up(tm, sublane), tm_cap))
    grid = (pl.cdiv(M, TM),)                   # ragged last tile is masked by Pallas

    # True (unpadded) cost for XLA's scheduler.
    cost = pl.CostEstimate(
        flops=2 * M * K * N,
        transcendentals=0,
        bytes_accessed=(M * K + K * N + N) * in_itemsize + M * N * out_itemsize,
    )

    # VMEM budget: double-buffered x / out tiles + weight & bias buffers.
    # TODO(synk): single-buffer the loop-invariant weight/bias (pl.Buffered(1))
    # once confirmed supported by the installed Pallas; constant index_map
    # already avoids re-DMA per step, this would only reclaim the 2nd buffer.
    vmem_need = (2 * TM * K + 2 * (K * N + N)) * in_itemsize + 2 * TM * N * out_itemsize
    vmem_limit = int(min(max(2 * vmem_need, 32 * 1024 * 1024), 48 * 1024 * 1024))

    out2d = pl.pallas_call(
        _linear_kernel,
        out_shape=jax.ShapeDtypeStruct((M, N), out_dtype),
        grid_spec=pltpu.PrefetchScalarGridSpec(
            num_scalar_prefetch=0,
            grid=grid,
            in_specs=[
                pl.BlockSpec((TM, K), lambda i: (i, 0)),   # x rows stream over M
                pl.BlockSpec((K, N), lambda i: (0, 0)),    # weight resident (fetched once)
                pl.BlockSpec((1, N), lambda i: (0, 0)),    # bias resident
            ],
            out_specs=pl.BlockSpec((TM, N), lambda i: (i, 0)),
        ),
        compiler_params=pltpu.CompilerParams(
            dimension_semantics=("parallel",),             # megacore-shard row tiles (v7x)
            vmem_limit_bytes=vmem_limit,
        ),
        cost_estimate=cost,
    )(x2d, wt, b2d)

    return out2d.reshape(B, L, keypoints, dims)


def init_pose_projection_params(key, latent_dim: int, input_feats: int, dtype=jnp.float32):
    """Deterministic init mimicking nn.Linear default: U(-1/sqrt(in), 1/sqrt(in))."""
    kw, kb = jax.random.split(key)
    bound = 1.0 / math.sqrt(latent_dim)
    weight = jax.random.uniform(kw, (input_feats, latent_dim), dtype,
                                minval=-bound, maxval=bound)
    bias = jax.random.uniform(kb, (input_feats,), dtype,
                              minval=-bound, maxval=bound)
    return weight, bias


if __name__ == "__main__":
    # Small shapes consistent with the module's forward.
    B, L = 2, 8
    latent_dim = 32
    keypoints, dims = 4, 3
    input_feats = keypoints * dims  # 12

    key = jax.random.PRNGKey(0)
    kx, kp = jax.random.split(key)

    x = jax.random.normal(kx, (B, L, latent_dim), dtype=jnp.float32)
    weight, bias = init_pose_projection_params(kp, latent_dim, input_feats)

    # force_pallas=True so the toy shapes exercise the kernel (instead of the
    # tiny-problem XLA fallback), as required for this check.
    out = pose_projection_forward(x, weight, bias, keypoints, dims, force_pallas=True)
    out = jax.block_until_ready(out)

    # Reference check in plain JAX (same math as nn.Linear + reshape).
    ref = (x.reshape(B * L, latent_dim) @ weight.T + bias).reshape(B, L, keypoints, dims)
    assert out.shape == (B, L, keypoints, dims)
    assert jnp.allclose(out, ref, atol=1e-5, rtol=1e-5)

    # Also check the default (fallback-enabled) path agrees.
    out_default = jax.block_until_ready(
        pose_projection_forward(x, weight, bias, keypoints, dims))
    assert jnp.allclose(out_default, ref, atol=1e-5, rtol=1e-5)

    print("KERNEL_OK")
</pallas_src>

<mosaic_0001>
module attributes {stable_mosaic.version = 11 : i64} {
  func.func @_linear_kernel(%arg0: i32, %arg1: memref<8x32xf32, #tpu.memory_space<vmem>>, %arg2: memref<32x12xf32, #tpu.memory_space<vmem>>, %arg3: memref<1x12xf32, #tpu.memory_space<vmem>>, %arg4: memref<8x12xf32, #tpu.memory_space<vmem>>) attributes {dimension_semantics = [#tpu.dimension_semantics<parallel>], iteration_bounds = array<i64: 2>, scalar_prefetch = 0 : i64, scratch_operands = 0 : i64, tpu.core_type = #tpu.core_type<tc>, window_params = [{transform_indices = @transform_0, window_bounds = array<i64: 8, 32>}, {pipeline_mode = #tpu.pipeline_mode<synchronous>, transform_indices = @transform_1, window_bounds = array<i64: 32, 12>}, {pipeline_mode = #tpu.pipeline_mode<synchronous>, transform_indices = @transform_2, window_bounds = array<i64: 1, 12>}, {transform_indices = @transform_3, window_bounds = array<i64: 8, 12>}]} {
    %c0 = arith.constant 0 : index
    %c0_0 = arith.constant 0 : index
    %0 = vector.load %arg1[%c0, %c0_0] : memref<8x32xf32, #tpu.memory_space<vmem>>, vector<8x32xf32>
    %c0_1 = arith.constant 0 : index
    %c0_2 = arith.constant 0 : index
    %1 = vector.load %arg2[%c0_1, %c0_2] : memref<32x12xf32, #tpu.memory_space<vmem>>, vector<32x12xf32>
    %cst = arith.constant dense<0.000000e+00> : vector<8x12xf32>
    %2 = tpu.matmul %0, %1, %cst {dimension_numbers = #tpu.dot_dimension_numbers<[1], [0], [0], [1], [0, 0, 1, 1], [], []>} : vector<8x32xf32>, vector<32x12xf32>, vector<8x12xf32> -> vector<8x12xf32>
    %c0_3 = arith.constant 0 : index
    %c0_4 = arith.constant 0 : index
    %3 = vector.load %arg3[%c0_3, %c0_4] : memref<1x12xf32, #tpu.memory_space<vmem>>, vector<1x12xf32>
    %4 = vector.broadcast %3 : vector<1x12xf32> to vector<8x12xf32>
    %5 = arith.addf %2, %4 : vector<8x12xf32>
    %c0_5 = arith.constant 0 : index
    %c0_6 = arith.constant 0 : index
    %6 = vector.load %arg4[%c0_5, %c0_6] : memref<8x12xf32, #tpu.memory_space<vmem>>, vector<8x12xf32>
    tpu.vector_store %arg4[%c0_5, %c0_6], %5 {strides = array<i32>} : memref<8x12xf32, #tpu.memory_space<vmem>>, vector<8x12xf32>,
    return
  }
  func.func @transform_0(%arg0: i32) -> (i32, i32) {
    %c0_i32 = arith.constant 0 : i32
    %c0_i32_0 = arith.constant 0 : i32
    return %arg0, %c0_i32 : i32, i32
  }
  func.func @transform_1(%arg0: i32) -> (i32, i32) {
    %c0_i32 = arith.constant 0 : i32
    %c0_i32_0 = arith.constant 0 : i32
    %c0_i32_1 = arith.constant 0 : i32
    return %c0_i32, %c0_i32_0 : i32, i32
  }
  func.func @transform_2(%arg0: i32) -> (i32, i32) {
    %c0_i32 = arith.constant 0 : i32
    %c0_i32_0 = arith.constant 0 : i32
    %c0_i32_1 = arith.constant 0 : i32
    return %c0_i32, %c0_i32_0 : i32, i32
  }
  func.func @transform_3(%arg0: i32) -> (i32, i32) {
    %c0_i32 = arith.constant 0 : i32
    %c0_i32_0 = arith.constant 0 : i32
    return %arg0, %c0_i32 : i32, i32
  }
}

</mosaic_0001>

<bundles_post_ra>
// kernel: tpu_custom_call.1
= control target key start
LH: loop header
LB: loop body
LE: loop exit
PB: predicated region body
PF: predicated region fallthrough
CT: control target
= control target key end

     0   :  { %8 = vsyncpa [#allocation3], 0  ;;  %s511_s0 = inlined_call_operand.vmem [shape: f32[16,32], index: 0, kind: input, shape index: {}]   ;;  %s512_s1 = inlined_call_operand.vmem [shape: f32[32,12], index: 1, kind: input, shape index: {}]   ;;  %s513_s2 = inlined_call_operand.vmem [shape: f32[1,12], index: 2, kind: input, shape index: {}]   ;;  %s514_s3 = inlined_call_operand.hbm [shape: f32[16,12], index: 3, kind: output, shape index: {}]  }
   0x1   :  { %10 = vsyncpa [#allocation3 + $0x1], 0  ;;  %s411_s12 = smov 0   ;;  %s413_s13 = smov 0  }
   0x2   :  { %s415_s14 = smov 0   ;;  %s417_s15 = smov 0  }
   0x3 LB: > { %s432_s16 = sadd.s32 4294967295, %s389_s15   ;;  %s276_s17 = sadd.s32 4294967294, %s389_s15   ;;  %s389_s15 = sphi %s417_s15, %s520_s15   ;;  %s385_s14 = sphi %s415_s14, %s519_s14   ;;  %s381_s13 = sphi %s413_s13, %s518_s13   ;;  %s377_s12 = sphi %s411_s12, %s517_s12  }
   0x4   : > { %s436_s18 = sadd.s32 1, %s389_s15   ;;  %s91_s19 = sadd.s32 1, %s385_s14 }
   0x5   : > { %s88_s20 = ssub.s32 %s389_s15, %s436_s18  ;;  %p101_p0 = scmp.ne.s32.totalorder %s385_s14, %s381_s13 }
   0x6   : > { %p89_p1 = scmp.eq.s32.totalorder %s88_s20, 0  ;;  %p102_p2 = scmp.eq.s32.totalorder %s432_s16, 1 }
   0x7   : > { %p107_p3 = scmp.ne.s32.totalorder %s381_s13, %s377_s12  ;;  %p108_p4 = scmp.eq.s32.totalorder %s276_s17, 1 }
   0x8   : > { %s447_s21 = scalar_select %p89_p1, %s385_s14, %s91_s19  }
   0x9   : > { %p449_p5 = por %p102_p2, %p101_p0  ;;  %p453_p6 = por %p108_p4, %p107_p3 }
   0xa   : > { %p279_p7 = scmp.ge.s32.totalorder %s389_s15, 1  ;;  %p139_p8 = scmp.lt.s32.totalorder %s389_s15, 3 }
   0xc   : > { %p140_p9 = pnand %p279_p7, %p139_p8 }
   0xd   : > { %p162_p10 = scmp.lt.s32.totalorder (!%p140_p9), %s432_s16, 1  ;;  %s159_s10 = sand.u32 (!%p140_p9), 1, %s381_s13  }
   0xe   : > { %143 = sbr.rel (%p140_p9) target bundleno = 158 (0x9e), region = 32  ;;  %s280_s11 = sshll.u32 (!%p140_p9), %s159_s10, 3 }
   0xf   : > { %s284_s17 = sshll.u32 (!%p140_p9), %s432_s16, 3  ;;  %s161_s27 = scalar_lea.vmem (!%p140_p9), [#allocation2], %s280_s11 }
  0x10   : > { %s212_s24 = scalar_lea.hbm (!%p140_p9), %s514_s3, %s284_s17  ;;  %s214_s28 = sshll.u32 (!%p140_p9), %s161_s27, 4  ;;  %s215_s28 = int_to_ptr.vmem [resolvable:$true] %s214_s28 }
  0x11   : > { %s216_s29 = sshll.u32 (!%p140_p9), %s212_s24, 4  ;;  %s347_s7 = scalar_lea.hbm (!%p140_p9), %s514_s3, 16  ;;  %s217_s29 = int_to_ptr.hbm [resolvable:$true] %s216_s29 }
  0x13   : > { %v170_v0 = vld [vmem:[%s512_s1 + $0x18] sm:$0xff]  ;;  %v169_v1 = vld [vmem:[%s512_s1 + $0x10] sm:$0xff]  ;;  %v168_v2 = vld [vmem:[%s512_s1 + $0x8] sm:$0xff]  ;;  %s163_s30 = scalar_select %p162_p10, %s432_s16, 1  ;;  %vm175_vm0 = vcmask 261120   ;;  %vm199_vm1 = vcmask 97280  }
  0x14   : > { %191 = vmatpush.msra.mxu0 %v170_v0  ;;  %v167_v3 = vld [vmem:[%s512_s1] sm:$0xff]  ;;  %s341_s16 = sshra.s32 %s217_s29, 4  ;;  %s342_s16 = int_to_ptr.hbm [resolvable:$true] %s341_s16 }
  0x15   : > { %s281_s6 = sshll.u32 %s163_s30, 3  ;;  %v326_v5 = vld [vmem:[%s513_s2] ss:$0 sm:$0xff]  ;;  %s202_s30 = scalar_lea.sflag [#allocation3], %s159_s10 }
  0x16   : > { %192 = vmatpush.msra.mxu0 %v169_v1  ;;  %s165_s9 = scalar_lea.vmem %s511_s0, %s281_s6  ;;  %s343_s4 = scalar_lea.hbm %s342_s16, 8 }
  0x17   : > { %v166_v4 = vld [vmem:[%s165_s9] sm:$0xff]  ;;  %p344_p11 = scmp.ne.s32.totalorder %s342_s16, %s343_s4  ;;  %p348_p0 = scmp.lt.s32.totalorder %s342_s16, %s514_s3 }
  0x18   : > { %193 = vmatpush.msra.mxu0 %v168_v2  ;;  %p349_p1 = scmp.lt.s32.totalorder %s347_s7, %s343_s4 }
  0x19   : > { %p345_p12 = pnand %p344_p11, %p449_p5 }
  0x1a   : > { %194 = vmatpush.msra.mxu0 %v167_v3  ;;  %p350_p2 = por %p349_p1, %p348_p0 }
  0x1b   : > { %282 = vmatmul.msk.f32.vlgmr.msra.gmra.mxu0 %vm175_vm0, %v166_v4  ;;  %p346_p13 = pneg %p345_p12 }
  0x1d   : > { %p351_p3 = pnand %p350_p2, %p346_p13 }
  0x98   : > { %v196_v6 = vpop.f32.mrf.mxu0 }
  0x99   : > { %v197_v7 = vadd.f32 %v326_v5, %v196_v6 }
  0x9b   : > { %200 = vst.msk [vmem:[%s161_s27] sm:$0xff] %vm199_vm1, %v197_v7 }
  0x9c   : > { %354 = shalt.err (!%p351_p3)
}
  0x9d   : > { %287 = dma.vmem_to_hbm [thread:$0]  (%p449_p5), %s215_s28, 128, %s217_s29, %s202_s30  }
  0x9e PF: > { %p293_p4 = scmp.ge.s32.totalorder %s389_s15, 2  ;;  %s228_s10 = sand.u32 1, %s377_s12  }
  0x9f   : > { %s229_s11 = scalar_lea.sflag [#allocation3], %s228_s10 }
  0xa0   : > { %p290_p7 = pnand %p293_p4, %p453_p6 }
  0xa2   : > { %p291_p8 = pneg %p290_p7 }
  0xa4   : > { %372 = dma.done.wait (%p291_p8), %s229_s11, 128  }
  0xa5   : > { %374 = vsyncadd (%p291_p8), %s229_s11, 4294967168  ;;  %p13_p9 = scmp.ge.s32.totalorder %s436_s18, 4   ;;  %s517_s12 = smov %s381_s13 }
  0xa6   : > { %s518_s13 = smov %s385_s14  ;;  %s519_s14 = smov %s447_s21 }
  0xa7   : > { %s520_s15 = smov %s436_s18  ;;  %15 = sbr.rel (!%p13_p9) target bundleno = 3 (0x3), region = 67 }
  0xac   :  { %235 = vsyncpa [#allocation3], 1 }
  0xad   :  { %237 = vsyncpa [#allocation3 + $0x1], 1 }

</bundles_post_ra>
